<compile_context>
chip_gen: v6e
topology: v6e:2x2x1
jax: 0.10.0
libtpu: 0.0.40
codegen_flags: <defaults>
</compile_context>

<pallas_src>
import jax
import jax.numpy as jnp
from jax.experimental import pallas as pl
from jax.experimental.pallas import tpu as pltpu

_LANE = 128
_SUBLANE = 8
# ~2 MiB per tile; x4 (input + output, each double-buffered) ~= 8 MiB live VMEM.
# Safe under v5e (16 MiB), v6e (32 MiB) and v7x (32 MiB) scoped-VMEM defaults.
_TARGET_TILE_BYTES = 2 * 1024 * 1024


def _identity_kernel(x_ref, o_ref):
    # Full-tile load -> store (identity / pass-through).
    o_ref[...] = x_ref[...]


def concat_pooling(x, mask=None):
    """ConcatPooling.forward production path: true identity, no kernel launched."""
    del mask  # ignored by the reference forward
    return x


def _row_tile(rows, cols, itemsize):
    """Largest multiple-of-8 row tile under the byte budget, with a v7x 2-step split."""
    bytes_per_row = max(cols * itemsize, 1)
    tile_rows = max(_SUBLANE, (_TARGET_TILE_BYTES // bytes_per_row) // _SUBLANE * _SUBLANE)
    if rows <= tile_rows:
        if rows >= 2 * _SUBLANE:
            # v7x megacore: guarantee >= 2 steps on the "parallel" grid axis so
            # both TensorCores get work even when the array fits one tile.
            tile_rows = max(_SUBLANE, (rows // 2) // _SUBLANE * _SUBLANE)
        else:
            # Tiny input: single block equal to the full array extent (always legal).
            tile_rows = rows
    return tile_rows


def _pallas_identity_2d(x2d, *, donate=False):
    rows, cols = x2d.shape
    itemsize = jnp.dtype(x2d.dtype).itemsize
    tile_rows = _row_tile(rows, cols, itemsize)
    grid = (pl.cdiv(rows, tile_rows),)
    nbytes = rows * cols * itemsize

    return pl.pallas_call(
        _identity_kernel,
        out_shape=jax.ShapeDtypeStruct((rows, cols), x2d.dtype),
        grid_spec=pltpu.PrefetchScalarGridSpec(
            num_scalar_prefetch=0,
            grid=grid,
            in_specs=[pl.BlockSpec((tile_rows, cols), lambda i: (i, 0))],
            out_specs=pl.BlockSpec((tile_rows, cols), lambda i: (i, 0)),
        ),
        # P8 only when the caller actually donates the operand; aliasing a
        # non-donated buffer forces XLA to insert a defensive copy (slower).
        input_output_aliases=({0: 0} if donate else {}),
        # Accurate picture for XLA's scheduler: pure copy, 2*nbytes of HBM traffic.
        cost_estimate=pl.CostEstimate(
            flops=0, transcendentals=0, bytes_accessed=2 * nbytes),
        compiler_params=pltpu.CompilerParams(
            dimension_semantics=("parallel",),
        ),
    )(x2d)


def concat_pooling_pallas(x, mask=None, *, donate=False):
    """Pallas pass-through (kept as a fusion anchor; semantics == identity)."""
    del mask  # ignored by the reference forward
    n = x.size
    flat = x.reshape(-1)
    bulk = (n // _LANE) * _LANE
    if bulk == n:
        # Lane-dense flatten: every store is a full-lane (128-wide) unmasked vst.
        out2d = _pallas_identity_2d(flat.reshape(-1, _LANE), donate=donate)
        return out2d.reshape(x.shape)
    if bulk == 0:
        # Fewer than 128 elements: not worth launching a kernel for an identity.
        return x
    # n % 128 != 0: copy the 128-aligned bulk lane-dense (unmasked stores) and
    # carry the < 128-element tail through unchanged.
    # TODO(synk): fold the tail into the same call if a masked variant lands.
    bulk_out = _pallas_identity_2d(flat[:bulk].reshape(-1, _LANE), donate=False)
    return jnp.concatenate([bulk_out.reshape(-1), flat[bulk:]]).reshape(x.shape)


if __name__ == "__main__":
    key = jax.random.PRNGKey(0)

    # Shapes implied by the module's usage: (batch, seq, hidden).
    B, S, H = 2, 8, 32
    x = jax.random.normal(key, (B, S, H), dtype=jnp.float32)
    # A mask argument exists in the PyTorch signature but is unused.
    mask = jnp.ones((B, S), dtype=jnp.float32)

    # Production path: pure identity, no kernel launched.
    fast = concat_pooling(x, mask)
    assert fast is x

    # Pallas path (lane-dense, single call).
    out = jax.block_until_ready(concat_pooling_pallas(x, mask))
    assert out.shape == x.shape and out.dtype == x.dtype
    assert bool(jnp.all(out == x))

    # Exercise the >= 2-grid-step split (rows >= 16 after lane-dense flatten).
    key2 = jax.random.PRNGKey(0)
    x2 = jax.random.normal(key2, (2, 16, 64), dtype=jnp.float32)   # n = 2048 -> rows = 16
    out2 = jax.block_until_ready(concat_pooling_pallas(x2))
    assert bool(jnp.all(out2 == x2))

    # Exercise the n % 128 != 0 fallback (bulk lane-dense + tail pass-through).
    x3 = jax.random.normal(key2, (2, 8, 33), dtype=jnp.float32)    # n = 528
    out3 = jax.block_until_ready(concat_pooling_pallas(x3))
    assert out3.shape == x3.shape and bool(jnp.all(out3 == x3))

    print("KERNEL_OK")
</pallas_src>

<mosaic_0001>
module attributes {stable_mosaic.version = 11 : i64} {
  func.func @_identity_kernel(%arg0: i32, %arg1: memref<4x128xf32, #tpu.memory_space<vmem>>, %arg2: memref<4x128xf32, #tpu.memory_space<vmem>>) attributes {dimension_semantics = [#tpu.dimension_semantics<parallel>], iteration_bounds = array<i64: 1>, scalar_prefetch = 0 : i64, scratch_operands = 0 : i64, tpu.core_type = #tpu.core_type<tc>, window_params = [{transform_indices = @transform_0, window_bounds = array<i64: 4, 128>}, {transform_indices = @transform_1, window_bounds = array<i64: 4, 128>}]} {
    %c0 = arith.constant 0 : index
    %c0_0 = arith.constant 0 : index
    %0 = vector.load %arg1[%c0, %c0_0] : memref<4x128xf32, #tpu.memory_space<vmem>>, vector<4x128xf32>
    %c0_1 = arith.constant 0 : index
    %c0_2 = arith.constant 0 : index
    %1 = vector.load %arg2[%c0_1, %c0_2] : memref<4x128xf32, #tpu.memory_space<vmem>>, vector<4x128xf32>
    tpu.vector_store %arg2[%c0_1, %c0_2], %0 {strides = array<i32>} : memref<4x128xf32, #tpu.memory_space<vmem>>, vector<4x128xf32>,
    return
  }
  func.func @transform_0(%arg0: i32) -> (i32, i32) {
    %c0_i32 = arith.constant 0 : i32
    %c0_i32_0 = arith.constant 0 : i32
    return %arg0, %c0_i32 : i32, i32
  }
  func.func @transform_1(%arg0: i32) -> (i32, i32) {
    %c0_i32 = arith.constant 0 : i32
    %c0_i32_0 = arith.constant 0 : i32
    return %arg0, %c0_i32 : i32, i32
  }
}

</mosaic_0001>

<bundles_post_ra>
// kernel: tpu_custom_call.1
= control target key start
LH: loop header
LB: loop body
LE: loop exit
PB: predicated region body
PF: predicated region fallthrough
CT: control target
= control target key end

     0   :  { %6 = vsyncpa [#allocation3], 0  ;;  %s102_s0 = inlined_call_operand.hbm [shape: f32[4,128], index: 0, kind: input, shape index: {}]   ;;  %s103_s1 = inlined_call_operand.hbm [shape: f32[4,128], index: 1, kind: output, shape index: {}]  }
   0x1   :  { %7 = vsyncpa [#allocation4], 0  ;;  %s84_s6 = smov [#allocation2]  }
   0x2   :  { %s14_s7 = sshll.u32 %s84_s6, 4  ;;  %s15_s7 = int_to_ptr.vmem [resolvable:$true] %s14_s7 }
   0x3   :  { %s48_s8 = scalar_lea.vmem %s15_s7, 64  ;;  %p53_p1 = scmp.lt.s32.totalorder %s15_s7, %s15_s7 }
   0x4   :  { %p49_p0 = scmp.ne.s32.totalorder %s15_s7, %s48_s8  ;;  %p54_p2 = scmp.lt.s32.totalorder %s48_s8, %s48_s8 }
   0x6   :  { %p55_p3 = por %p54_p2, %p53_p1 }
   0x8   :  { %p56_p4 = pnand %p55_p3, %p49_p0 }
   0xa   :  { %59 = shalt.err (!%p56_p4)
}
   0xb   :  { %17 = dma.hbm_to_vmem [thread:$0]  %s102_s0, 64, %s15_s7, [#allocation3]  }
   0xc   :  { %80 = dma.done.wait [#allocation3], 64  }
   0xd   :  { %81 = vsyncadd [#allocation3], 4294967232  ;;  %s85_s11 = smov [#allocation5]   ;;  %v21_v0 = vld [vmem:[#allocation2] sm:$0xf] }
   0xe   :  { %s29_s12 = sshll.u32 %s85_s11, 4  ;;  %22 = vst [vmem:[#allocation5] sm:$0xf] %v21_v0  ;;  %s30_s12 = int_to_ptr.vmem [resolvable:$true] %s29_s12 }
   0xf   :  { %s60_s13 = scalar_lea.vmem %s30_s12, 64  ;;  %p65_p6 = scmp.lt.s32.totalorder %s30_s12, %s30_s12 }
  0x10   :  { %p61_p5 = scmp.ne.s32.totalorder %s30_s12, %s60_s13  ;;  %p66_p7 = scmp.lt.s32.totalorder %s60_s13, %s60_s13 }
  0x12   :  { %p67_p8 = por %p66_p7, %p65_p6 }
  0x14   :  { %p68_p9 = pnand %p67_p8, %p61_p5 }
  0x16   :  { %71 = shalt.err (!%p68_p9)
}
  0x17   :  { %32 = dma.vmem_to_hbm [thread:$0]  %s30_s12, 64, %s103_s1, [#allocation4]  }
  0x18   :  { %82 = dma.done.wait [#allocation4], 64  }
  0x19   :  { %83 = vsyncadd [#allocation4], 4294967232 }
  0x1a   :  { %36 = vsyncpa [#allocation3], 1 }
  0x1b   :  { %37 = vsyncpa [#allocation4], 1 }

</bundles_post_ra>
